<compile_context>
chip_gen: v7x
topology: tpu7x:2x2x1
jax: 0.10.0
libtpu: 0.0.40
codegen_flags: <defaults>
</compile_context>

<pallas_src>
import jax
import jax.numpy as jnp
from jax.experimental import pallas as pl
from jax.experimental.pallas import tpu as pltpu

_LANES = 128
_SUBLANES = 8
_MAX_TILE_ROWS = 512  # 512x128xf32 = 256 KiB/tile/input; fits easily in scoped
                      # VMEM on v5e (16 MiB) / v6e / v7x with double buffering.


def _partial_sq_diff_kernel(a_ref, b_ref, out_ref):
    """One (tile_rows, 128) tile -> (8, 128) lane-parallel partial sums."""
    a = a_ref[...].astype(jnp.float32)
    b = b_ref[...].astype(jnp.float32)
    d = a - b
    sq = d * d
    tr = sq.shape[0]
    # Reduce tile_rows down to 8 sublanes with vreg-aligned elementwise adds
    # (VPU); the final cross-lane reduce is done once in the wrapper.
    out_ref[...] = jnp.sum(sq.reshape(tr // _SUBLANES, _SUBLANES, _LANES), axis=0)


def center_loss(label, feat, centers, size_average=True):
    """label: (B,) int, feat: (B, ...) flattened to (B, feat_dim),
    centers: (num_classes, feat_dim). Returns scalar float32 loss."""
    B = feat.shape[0]
    feat = feat.reshape(B, -1)
    D = feat.shape[1]
    if D != centers.shape[1]:
        raise ValueError(
            "Center's dim: {0} should be equal to input feature's dim: {1}".format(
                centers.shape[1], D
            )
        )
    label = label.astype(jnp.int32)

    # Hoisted gather (review option (a)): XLA handles centers[label] efficiently;
    # the kernel only streams two identically-laid-out slabs.
    centers_batch = jnp.take(centers, label, axis=0)  # (B, D), centers.dtype

    # Lane-dense repack: view the whole problem as a flat elementwise reduction.
    n = B * D
    rows = pl.cdiv(n, _LANES)
    rows_rounded = ((rows + _SUBLANES - 1) // _SUBLANES) * _SUBLANES
    tile_rows = min(_MAX_TILE_ROWS, rows_rounded)
    rows_pad = ((rows + tile_rows - 1) // tile_rows) * tile_rows
    n_pad = rows_pad * _LANES
    num_tiles = rows_pad // tile_rows

    def to_slab(x):
        x = x.reshape(-1)
        # Zero-pad both operands identically: padded positions give diff == 0,
        # so they contribute nothing to the sum (no in-kernel masking needed).
        x = jnp.pad(x, (0, n_pad - n))
        return x.reshape(rows_pad, _LANES)

    a = to_slab(feat)
    b = to_slab(centers_batch)

    partials = pl.pallas_call(
        _partial_sq_diff_kernel,
        out_shape=jax.ShapeDtypeStruct((num_tiles * _SUBLANES, _LANES), jnp.float32),
        grid_spec=pltpu.PrefetchScalarGridSpec(
            num_scalar_prefetch=0,
            grid=(num_tiles,),
            in_specs=[
                pl.BlockSpec((tile_rows, _LANES), lambda i: (i, 0)),
                pl.BlockSpec((tile_rows, _LANES), lambda i: (i, 0)),
            ],
            out_specs=pl.BlockSpec((_SUBLANES, _LANES), lambda i: (i, 0)),
        ),
        compiler_params=pltpu.CompilerParams(
            # No resident accumulator -> grid steps are independent and can be
            # sharded across both TensorCores on v7x.
            dimension_semantics=("parallel",),
        ),
    )(a, b)

    loss = jnp.sum(partials) * 0.5  # single final cross-lane reduce, in XLA
    if size_average:
        loss = loss / B  # true batch size (independent of padding / tiling)
    return loss


class CenterLossPallas:
    """Mirror of the PyTorch CenterLoss module (forward only)."""

    def __init__(self, num_classes, feat_dim, size_average=True, key=None):
        if key is None:
            key = jax.random.PRNGKey(1)
        # torch.randn-style deterministic init
        self.centers = jax.random.normal(
            key, (num_classes, feat_dim), dtype=jnp.float32
        )
        self.feat_dim = feat_dim
        self.size_average = size_average

    def __call__(self, label, feat):
        return center_loss(label, feat, self.centers, self.size_average)


if __name__ == "__main__":
    key = jax.random.PRNGKey(0)
    k_feat, k_lbl, k_ctr, k_feat2, k_lbl2, k_ctr2 = jax.random.split(key, 6)

    # --- small shapes consistent with the module ---
    num_classes, feat_dim, batch = 10, 32, 8
    feat = jax.random.normal(k_feat, (batch, feat_dim), dtype=jnp.float32)
    label = jax.random.randint(k_lbl, (batch,), 0, num_classes, dtype=jnp.int32)
    module = CenterLossPallas(num_classes, feat_dim, size_average=True, key=k_ctr)

    loss = module(label, feat)
    loss = jax.block_until_ready(loss)

    centers_batch = module.centers[label]
    ref = jnp.sum((feat - centers_batch) ** 2) / 2.0 / batch
    assert jnp.allclose(loss, ref, rtol=1e-5, atol=1e-5), (loss, ref)

    # --- second check: exercises multiple grid tiles and row padding ---
    num_classes2, feat_dim2, batch2 = 20, 257, 300
    feat2 = jax.random.normal(k_feat2, (batch2, feat_dim2), dtype=jnp.float32)
    label2 = jax.random.randint(k_lbl2, (batch2,), 0, num_classes2, dtype=jnp.int32)
    module2 = CenterLossPallas(num_classes2, feat_dim2, size_average=False, key=k_ctr2)

    loss2 = module2(label2, feat2)
    loss2 = jax.block_until_ready(loss2)

    centers_batch2 = module2.centers[label2]
    ref2 = jnp.sum((feat2 - centers_batch2) ** 2) / 2.0
    assert jnp.allclose(loss2, ref2, rtol=1e-4, atol=1e-4), (loss2, ref2)

    print("KERNEL_OK")
</pallas_src>

<mosaic_0001>
module attributes {stable_mosaic.version = 11 : i64} {
  func.func @_partial_sq_diff_kernel(%arg0: i32, %arg1: memref<8x128xf32, #tpu.memory_space<vmem>>, %arg2: memref<8x128xf32, #tpu.memory_space<vmem>>, %arg3: memref<8x128xf32, #tpu.memory_space<vmem>>) attributes {dimension_semantics = [#tpu.dimension_semantics<parallel>], iteration_bounds = array<i64: 1>, scalar_prefetch = 0 : i64, scratch_operands = 0 : i64, tpu.core_type = #tpu.core_type<tc>, window_params = [{transform_indices = @transform_0, window_bounds = array<i64: 8, 128>}, {transform_indices = @transform_1, window_bounds = array<i64: 8, 128>}, {transform_indices = @transform_2, window_bounds = array<i64: 8, 128>}]} {
    %c0 = arith.constant 0 : index
    %c0_0 = arith.constant 0 : index
    %0 = vector.load %arg1[%c0, %c0_0] : memref<8x128xf32, #tpu.memory_space<vmem>>, vector<8x128xf32>
    %c0_1 = arith.constant 0 : index
    %c0_2 = arith.constant 0 : index
    %1 = vector.load %arg2[%c0_1, %c0_2] : memref<8x128xf32, #tpu.memory_space<vmem>>, vector<8x128xf32>
    %2 = arith.subf %0, %1 : vector<8x128xf32>
    %3 = arith.mulf %2, %2 : vector<8x128xf32>
    %4 = vector.shape_cast %3 : vector<8x128xf32> to vector<1x8x128xf32>
    %cst = arith.constant dense<0.000000e+00> : vector<8x128xf32>
    %5 = vector.multi_reduction <add>, %4, %cst [0] : vector<1x8x128xf32> to vector<8x128xf32>
    %c0_3 = arith.constant 0 : index
    %c0_4 = arith.constant 0 : index
    %6 = vector.load %arg3[%c0_3, %c0_4] : memref<8x128xf32, #tpu.memory_space<vmem>>, vector<8x128xf32>
    tpu.vector_store %arg3[%c0_3, %c0_4], %5 {strides = array<i32>} : memref<8x128xf32, #tpu.memory_space<vmem>>, vector<8x128xf32>,
    return
  }
  func.func @transform_0(%arg0: i32) -> (i32, i32) {
    %c0_i32 = arith.constant 0 : i32
    %c0_i32_0 = arith.constant 0 : i32
    return %arg0, %c0_i32 : i32, i32
  }
  func.func @transform_1(%arg0: i32) -> (i32, i32) {
    %c0_i32 = arith.constant 0 : i32
    %c0_i32_0 = arith.constant 0 : i32
    return %arg0, %c0_i32 : i32, i32
  }
  func.func @transform_2(%arg0: i32) -> (i32, i32) {
    %c0_i32 = arith.constant 0 : i32
    %c0_i32_0 = arith.constant 0 : i32
    return %arg0, %c0_i32 : i32, i32
  }
}

</mosaic_0001>

<bundles_post_ra>
// kernel: tpu_custom_call.1
= control target key start
LH: loop header
LB: loop body
LE: loop exit
PB: predicated region body
PF: predicated region fallthrough
CT: control target
= control target key end

     0   :  { %7 = vsyncpa [#allocation3], 0  ;;  %s187_s0 = inlined_call_operand.hbm [shape: f32[8,128], index: 0, kind: input, shape index: {}]   ;;  %s188_s1 = inlined_call_operand.hbm [shape: f32[8,128], index: 1, kind: input, shape index: {}]   ;;  %s189_s2 = inlined_call_operand.hbm [shape: f32[8,128], index: 2, kind: output, shape index: {}]  }
   0x1   :  { %8 = vsyncpa [#allocation6], 0 }
   0x2   :  { %9 = vsyncpa [#allocation4], 0  ;;  %s133_s9 = smov [#allocation2]   ;;  %s134_s11 = smov [#allocation5]  }
   0x3   :  { %s16_s10 = sshll.u32 %s133_s9, 4  ;;  %s26_s12 = sshll.u32 %s134_s11, 4  ;;  %s17_s10 = int_to_ptr.vmem [resolvable:$true] %s16_s10  ;;  %s27_s12 = int_to_ptr.vmem [resolvable:$true] %s26_s12 }
   0x4   :  { %s61_s15 = scalar_lea.hbm %s187_s0, 128 }
   0x5   :  { %p62_p0 = scmp.ne.s32.totalorder %s187_s0, %s61_s15  ;;  %p65_p1 = scmp.lt.u32.totalorder %s61_s15, %s187_s0 }
   0x7   :  { %p67_p2 = pnand %p65_p1, %p62_p0 }
   0x9   :  { %70 = shalt.err (!%p67_p2)
}
   0xa   :  { %s71_s20 = scalar_lea.vmem %s17_s10, 128  ;;  %p76_p4 = scmp.lt.s32.totalorder %s17_s10, %s17_s10 }
   0xb   :  { %p72_p3 = scmp.ne.s32.totalorder %s17_s10, %s71_s20  ;;  %p77_p5 = scmp.lt.s32.totalorder %s71_s20, %s71_s20 }
   0xd   :  { %p78_p6 = por %p77_p5, %p76_p4 }
   0xf   :  { %p79_p7 = pnand %p78_p6, %p72_p3 }
  0x11   :  { %82 = shalt.err (!%p79_p7)
}
  0x12   :  { %19 = dma.hbm_to_vmem [thread:$0]  %s187_s0, 128, %s17_s10, [#allocation3]  }
  0x13   :  { %s83_s25 = scalar_lea.hbm %s188_s1, 128 }
  0x14   :  { %p84_p8 = scmp.ne.s32.totalorder %s188_s1, %s83_s25  ;;  %p87_p9 = scmp.lt.u32.totalorder %s83_s25, %s188_s1 }
  0x16   :  { %p89_p10 = pnand %p87_p9, %p84_p8 }
  0x18   :  { %92 = shalt.err (!%p89_p10)
}
  0x19   :  { %s93_s30 = scalar_lea.vmem %s27_s12, 128  ;;  %p98_p12 = scmp.lt.s32.totalorder %s27_s12, %s27_s12 }
  0x1a   :  { %p94_p11 = scmp.ne.s32.totalorder %s27_s12, %s93_s30  ;;  %p99_p13 = scmp.lt.s32.totalorder %s93_s30, %s93_s30 }
  0x1c   :  { %p100_p0 = por %p99_p13, %p98_p12 }
  0x1e   :  { %p101_p1 = pnand %p100_p0, %p94_p11 }
  0x20   :  { %104 = shalt.err (!%p101_p1)
}
  0x21   :  { %29 = dma.hbm_to_vmem [thread:$0]  %s188_s1, 128, %s27_s12, [#allocation6]  }
  0x22   :  { %127 = dma.done.wait [#allocation3], 128  }
  0x23   :  { %128 = vsyncadd [#allocation3], 4294967168 }
  0x24   :  { %129 = dma.done.wait [#allocation6], 128  }
  0x25   :  { %130 = vsyncadd [#allocation6], 4294967168  ;;  %v36_v0 = vld [vmem:[#allocation2] sm:$0xff]  ;;  %v37_v1 = vld [vmem:[#allocation5] sm:$0xff]  ;;  %s135_s4 = smov [#allocation7]  }
  0x26   :  { %s48_s5 = sshll.u32 %s135_s4, 4  ;;  %v38_v2 = vsub.f32 %v36_v0, %v37_v1  ;;  %s49_s5 = int_to_ptr.vmem [resolvable:$true] %s48_s5 }
  0x27   :  { %s105_s6 = scalar_lea.vmem %s49_s5, 128  ;;  %p110_p3 = scmp.lt.s32.totalorder %s49_s5, %s49_s5 }
  0x28   :  { %v39_v3 = vmul.f32 %v38_v2, %v38_v2  ;;  %p106_p2 = scmp.ne.s32.totalorder %s49_s5, %s105_s6  ;;  %p111_p4 = scmp.lt.s32.totalorder %s105_s6, %s105_s6 }
  0x2a   :  { %41 = vst [vmem:[#allocation7] sm:$0xff] %v39_v3  ;;  %p112_p5 = por %p111_p4, %p110_p3 }
  0x2c   :  { %p113_p6 = pnand %p112_p5, %p106_p2 }
  0x2e   :  { %116 = shalt.err (!%p113_p6)
}
  0x2f   :  { %s117_s8 = scalar_lea.hbm %s189_s2, 128 }
  0x30   :  { %p118_p7 = scmp.ne.s32.totalorder %s189_s2, %s117_s8  ;;  %p121_p8 = scmp.lt.u32.totalorder %s117_s8, %s189_s2 }
  0x32   :  { %p123_p9 = pnand %p121_p8, %p118_p7 }
  0x34   :  { %126 = shalt.err (!%p123_p9)
}
  0x35   :  { %51 = dma.vmem_to_hbm [thread:$0]  %s49_s5, 128, %s189_s2, [#allocation4]  }
  0x36   :  { %131 = dma.done.wait [#allocation4], 128  }
  0x37   :  { %132 = vsyncadd [#allocation4], 4294967168 }
  0x38   :  { %55 = vsyncpa [#allocation3], 1 }
  0x39   :  { %56 = vsyncpa [#allocation6], 1 }
  0x3a   :  { %57 = vsyncpa [#allocation4], 1 }

</bundles_post_ra>
